<compile_context>
chip_gen: v7x
topology: tpu7x:2x2x1
jax: 0.10.0
libtpu: 0.0.40
codegen_flags: <defaults>
</compile_context>

<pallas_src>
import functools

import jax
import jax.numpy as jnp
from jax import lax
from jax.experimental import pallas as pl
from jax.experimental.pallas import tpu as pltpu

EPS = 1e-8

_TARGET_BLOCK_BYTES = 4 * 1024 * 1024   # per-input VMEM block target
_MAX_ROW_TILE = 512


def _round_down_mult(x, m):
    return (x // m) * m


def _choose_tiles(n, d, itemsize):
    """Pick (row_tile, d_chunk) so one input block is ~_TARGET_BLOCK_BYTES."""
    n8 = ((n + 7) // 8) * 8
    row_bytes = max(d * itemsize, 1)
    rows_fit = _TARGET_BLOCK_BYTES // row_bytes
    if rows_fit >= 8:
        # Full-D rows fit in the target block: contiguous DMA, single k step.
        d_chunk = d
        row_tile = min(_round_down_mult(rows_fit, 8), n8, _MAX_ROW_TILE)
        row_tile = max(row_tile, 8)
        # Keep >= 2 steps on the parallel row axis when possible so both
        # TensorCores on v7x get work.
        half = _round_down_mult(n8 // 2, 8)
        if half >= 8:
            row_tile = min(row_tile, half)
    else:
        # Very large observations (multi-megapixel): tile the D axis instead.
        row_tile = 8
        d_chunk = _round_down_mult(
            max(_TARGET_BLOCK_BYTES // (row_tile * itemsize), 128), 128)
        d_chunk = min(d_chunk, _round_down_mult(d, 128))
        d_chunk = max(d_chunk, 128)
    return row_tile, d_chunk


def _psnr_kernel(x_ref, y_ref, o_ref, acc_ref, *, scale, num_k, tail):
    # x_ref, y_ref: (row_tile, d_chunk) VMEM tiles in native dtype.
    # o_ref: (row_tile, 1) f32.  acc_ref: (row_tile, 1) f32 scratch.
    k = pl.program_id(1)

    @pl.when(k == 0)
    def _init():
        acc_ref[...] = jnp.zeros_like(acc_ref)

    x = x_ref[...].astype(jnp.float32)
    y = y_ref[...].astype(jnp.float32)
    diff = x - y
    sq = diff * diff

    if tail == 0:
        acc_ref[...] += jnp.sum(sq, axis=1, keepdims=True)
    else:
        # Last D-chunk extends past d: mask garbage lanes (only on that step).
        @pl.when(k < num_k - 1)
        def _full():
            acc_ref[...] += jnp.sum(sq, axis=1, keepdims=True)

        @pl.when(k == num_k - 1)
        def _masked():
            lane = lax.broadcasted_iota(jnp.int32, sq.shape, 1)
            acc_ref[...] += jnp.sum(jnp.where(lane < tail, sq, 0.0),
                                    axis=1, keepdims=True)

    @pl.when(k == num_k - 1)
    def _finalize():
        mse = acc_ref[...] * scale          # scale = 1 / (d * range^2)
        o_ref[...] = -10.0 * jnp.log10(mse + EPS)


def psnr(reference_observations, generated_observations, range_=1.0,
         *, row_tile=None, d_chunk=None):
    """Pallas PSNR.  Inputs: (bs, obs, C, H, W).  Returns (bs, obs) float32."""
    assert reference_observations.shape == generated_observations.shape
    bs, obs, c, h, w = reference_observations.shape
    n = bs * obs
    d = c * h * w

    # No upcast, no padding: pass the native-dtype (n, d) views straight in.
    x = reference_observations.reshape(n, d)
    y = generated_observations.reshape(n, d)

    itemsize = jnp.dtype(x.dtype).itemsize
    auto_rt, auto_dc = _choose_tiles(n, d, itemsize)
    row_tile = auto_rt if row_tile is None else row_tile
    d_chunk = auto_dc if d_chunk is None else min(d_chunk, d)

    num_i = pl.cdiv(n, row_tile)
    num_k = pl.cdiv(d, d_chunk)
    tail = d % d_chunk

    scale = 1.0 / (float(d) * float(range_) * float(range_))

    kernel = functools.partial(_psnr_kernel, scale=scale, num_k=num_k, tail=tail)

    block_bytes = row_tile * d_chunk * itemsize
    # 2 inputs x 2 pipeline buffers + headroom; explicit so v5e's 16 MiB
    # default does not cap the tiles, capped to stay safe on v7x (64 MiB).
    vmem_limit = int(min(max(4 * block_bytes + (8 << 20), 32 << 20), 56 << 20))

    out = pl.pallas_call(
        kernel,
        out_shape=jax.ShapeDtypeStruct((n, 1), jnp.float32),
        grid_spec=pltpu.PrefetchScalarGridSpec(
            num_scalar_prefetch=0,
            grid=(num_i, num_k),
            in_specs=[
                pl.BlockSpec((row_tile, d_chunk), lambda i, k: (i, k)),
                pl.BlockSpec((row_tile, d_chunk), lambda i, k: (i, k)),
            ],
            out_specs=pl.BlockSpec((row_tile, 1), lambda i, k: (i, 0)),
            scratch_shapes=[pltpu.VMEM((row_tile, 1), jnp.float32)],
        ),
        compiler_params=pltpu.CompilerParams(
            dimension_semantics=("parallel", "arbitrary"),
            vmem_limit_bytes=vmem_limit,
        ),
    )(x, y)

    # TODO(synk): output stays (row_tile, 1) lane-width-1 blocks (masked vst);
    # negligible here since it is written once per row tile at the last k step.
    return out[:, 0].reshape(bs, obs)


if __name__ == "__main__":
    key = jax.random.PRNGKey(0)
    k1, k2 = jax.random.split(key)

    bs, obs, c, h, w = 2, 4, 3, 16, 16
    ref = jax.random.uniform(k1, (bs, obs, c, h, w), dtype=jnp.float32)
    gen = jax.random.uniform(k2, (bs, obs, c, h, w), dtype=jnp.float32)

    # Pure-JAX reference.
    mse_ref = jnp.mean((ref - gen) ** 2, axis=(2, 3, 4))
    expected = -10.0 * jnp.log10(mse_ref + EPS)

    # Default auto-tiled path (single D step).
    score = jax.block_until_ready(psnr(ref, gen, range_=1.0))
    assert score.shape == (bs, obs)
    assert jnp.allclose(score, expected, atol=1e-4, rtol=1e-4), (score, expected)

    # Exercise the D-tiled accumulator path (exact split and ragged tail).
    score_split = jax.block_until_ready(psnr(ref, gen, range_=1.0, d_chunk=256))
    assert jnp.allclose(score_split, expected, atol=1e-4, rtol=1e-4)
    score_tail = jax.block_until_ready(psnr(ref, gen, range_=1.0, d_chunk=512))
    assert jnp.allclose(score_tail, expected, atol=1e-4, rtol=1e-4)

    # Non-unit range.
    expected_r = -10.0 * jnp.log10(jnp.mean(((ref - gen) / 2.5) ** 2,
                                            axis=(2, 3, 4)) + EPS)
    score_r = jax.block_until_ready(psnr(ref, gen, range_=2.5))
    assert jnp.allclose(score_r, expected_r, atol=1e-4, rtol=1e-4)

    print("KERNEL_OK")
</pallas_src>

<mosaic_0001>
module attributes {stable_mosaic.version = 11 : i64} {
  func.func @_psnr_kernel(%arg0: i32, %arg1: i32, %arg2: memref<8x768xf32, #tpu.memory_space<vmem>>, %arg3: memref<8x768xf32, #tpu.memory_space<vmem>>, %arg4: memref<8x1xf32, #tpu.memory_space<vmem>>, %arg5: memref<8x1xf32, #tpu.memory_space<vmem>>) attributes {dimension_semantics = [#tpu.dimension_semantics<parallel>, #tpu.dimension_semantics<arbitrary>], iteration_bounds = array<i64: 1, 1>, scalar_prefetch = 0 : i64, scratch_operands = 1 : i64, tpu.core_type = #tpu.core_type<tc>, window_params = [{transform_indices = @transform_0, window_bounds = array<i64: 8, 768>}, {transform_indices = @transform_1, window_bounds = array<i64: 8, 768>}, {transform_indices = @transform_2, window_bounds = array<i64: 8, 1>}]} {
    %c0_i32 = arith.constant 0 : i32
    %0 = arith.cmpi eq, %arg1, %c0_i32 : i32
    %1 = arith.extui %0 : i1 to i32
    %c0_i32_0 = arith.constant 0 : i32
    %2 = arith.cmpi ne, %1, %c0_i32_0 : i32
    scf.if %2 {
      %cst_10 = arith.constant 0.000000e+00 : f32
      %15 = vector.broadcast %cst_10 : f32 to vector<8x1xf32>
      %c0_11 = arith.constant 0 : index
      %c0_12 = arith.constant 0 : index
      %16 = vector.load %arg5[%c0_11, %c0_12] : memref<8x1xf32, #tpu.memory_space<vmem>>, vector<8x1xf32>
      tpu.vector_store %arg5[%c0_11, %c0_12], %15 {strides = array<i32>} : memref<8x1xf32, #tpu.memory_space<vmem>>, vector<8x1xf32>,
    } else {
    }
    %c0 = arith.constant 0 : index
    %c0_1 = arith.constant 0 : index
    %3 = vector.load %arg2[%c0, %c0_1] : memref<8x768xf32, #tpu.memory_space<vmem>>, vector<8x768xf32>
    %c0_2 = arith.constant 0 : index
    %c0_3 = arith.constant 0 : index
    %4 = vector.load %arg3[%c0_2, %c0_3] : memref<8x768xf32, #tpu.memory_space<vmem>>, vector<8x768xf32>
    %5 = arith.subf %3, %4 : vector<8x768xf32>
    %6 = arith.mulf %5, %5 : vector<8x768xf32>
    %c0_4 = arith.constant 0 : index
    %c0_5 = arith.constant 0 : index
    %7 = vector.load %arg5[%c0_4, %c0_5] : memref<8x1xf32, #tpu.memory_space<vmem>>, vector<8x1xf32>
    %cst = arith.constant dense<0.000000e+00> : vector<8xf32>
    %8 = vector.multi_reduction <add>, %6, %cst [1] : vector<8x768xf32> to vector<8xf32>
    %9 = vector.shape_cast %8 : vector<8xf32> to vector<8x1xf32>
    %10 = arith.addf %7, %9 : vector<8x1xf32>
    %c0_6 = arith.constant 0 : index
    %c0_7 = arith.constant 0 : index
    %11 = vector.load %arg5[%c0_6, %c0_7] : memref<8x1xf32, #tpu.memory_space<vmem>>, vector<8x1xf32>
    tpu.vector_store %arg5[%c0_6, %c0_7], %10 {strides = array<i32>} : memref<8x1xf32, #tpu.memory_space<vmem>>, vector<8x1xf32>,
    %c0_i32_8 = arith.constant 0 : i32
    %12 = arith.cmpi eq, %arg1, %c0_i32_8 : i32
    %13 = arith.extui %12 : i1 to i32
    %c0_i32_9 = arith.constant 0 : i32
    %14 = arith.cmpi ne, %13, %c0_i32_9 : i32
    scf.if %14 {
      %c0_10 = arith.constant 0 : index
      %c0_11 = arith.constant 0 : index
      %15 = vector.load %arg5[%c0_10, %c0_11] : memref<8x1xf32, #tpu.memory_space<vmem>>, vector<8x1xf32>
      %cst_12 = arith.constant 0.00130208337 : f32
      %16 = vector.broadcast %cst_12 : f32 to vector<8x1xf32>
      %17 = arith.mulf %15, %16 : vector<8x1xf32>
      %cst_13 = arith.constant 9.99999993E-9 : f32
      %18 = vector.broadcast %cst_13 : f32 to vector<8x1xf32>
      %19 = arith.addf %17, %18 : vector<8x1xf32>
      %20 = math.log %19 : vector<8x1xf32>
      %cst_14 = arith.constant 0.434294492 : f32
      %21 = vector.broadcast %cst_14 : f32 to vector<8x1xf32>
      %22 = arith.mulf %20, %21 : vector<8x1xf32>
      %cst_15 = arith.constant -1.000000e+01 : f32
      %23 = vector.broadcast %cst_15 : f32 to vector<8x1xf32>
      %24 = arith.mulf %23, %22 : vector<8x1xf32>
      %c0_16 = arith.constant 0 : index
      %c0_17 = arith.constant 0 : index
      %25 = vector.load %arg4[%c0_16, %c0_17] : memref<8x1xf32, #tpu.memory_space<vmem>>, vector<8x1xf32>
      tpu.vector_store %arg4[%c0_16, %c0_17], %24 {strides = array<i32>} : memref<8x1xf32, #tpu.memory_space<vmem>>, vector<8x1xf32>,
    } else {
    }
    return
  }
  func.func @transform_0(%arg0: i32, %arg1: i32) -> (i32, i32) {
    %c0_i32 = arith.constant 0 : i32
    return %arg0, %arg1 : i32, i32
  }
  func.func @transform_1(%arg0: i32, %arg1: i32) -> (i32, i32) {
    %c0_i32 = arith.constant 0 : i32
    return %arg0, %arg1 : i32, i32
  }
  func.func @transform_2(%arg0: i32, %arg1: i32) -> (i32, i32) {
    %c0_i32 = arith.constant 0 : i32
    %c0_i32_0 = arith.constant 0 : i32
    return %arg0, %c0_i32 : i32, i32
  }
}

</mosaic_0001>

<bundles_post_ra>
// kernel: tpu_custom_call.1
= control target key start
LH: loop header
LB: loop body
LE: loop exit
PB: predicated region body
PF: predicated region fallthrough
CT: control target
= control target key end

     0   :  { %7 = vsyncpa [#allocation4], 0  ;;  %s194_s0 = inlined_call_operand.hbm [shape: f32[8,768], index: 0, kind: input, shape index: {}]   ;;  %s195_s1 = inlined_call_operand.hbm [shape: f32[8,768], index: 1, kind: input, shape index: {}]   ;;  %s196_s2 = inlined_call_operand.vmem [shape: f32[8,1], index: 2, kind: output, shape index: {}]  }
   0x1   :  { %8 = vsyncpa [#allocation6], 0  ;;  %s146_s9 = smov [#allocation3]   ;;  %s147_s11 = smov [#allocation5]  }
   0x2   :  { %s15_s10 = sshll.u32 %s146_s9, 4  ;;  %s25_s12 = sshll.u32 %s147_s11, 4  ;;  %s16_s10 = int_to_ptr.vmem [resolvable:$true] %s15_s10  ;;  %s26_s12 = int_to_ptr.vmem [resolvable:$true] %s25_s12 }
   0x3   :  { %s98_s15 = scalar_lea.hbm %s194_s0, 768 }
   0x4   :  { %p99_p0 = scmp.ne.s32.totalorder %s194_s0, %s98_s15  ;;  %p102_p1 = scmp.lt.u32.totalorder %s98_s15, %s194_s0 }
   0x6   :  { %p104_p2 = pnand %p102_p1, %p99_p0 }
   0x8   :  { %107 = shalt.err (!%p104_p2)
}
   0x9   :  { %s108_s20 = scalar_lea.vmem %s16_s10, 768  ;;  %p113_p4 = scmp.lt.s32.totalorder %s16_s10, %s16_s10 }
   0xa   :  { %p109_p3 = scmp.ne.s32.totalorder %s16_s10, %s108_s20  ;;  %p114_p5 = scmp.lt.s32.totalorder %s108_s20, %s108_s20 }
   0xc   :  { %p115_p6 = por %p114_p5, %p113_p4 }
   0xe   :  { %p116_p7 = pnand %p115_p6, %p109_p3 }
  0x10   :  { %119 = shalt.err (!%p116_p7)
}
  0x11   :  { %18 = dma.hbm_to_vmem [thread:$0]  %s194_s0, 768, %s16_s10, [#allocation4]  }
  0x12   :  { %s120_s25 = scalar_lea.hbm %s195_s1, 768 }
  0x13   :  { %p121_p8 = scmp.ne.s32.totalorder %s195_s1, %s120_s25  ;;  %p124_p9 = scmp.lt.u32.totalorder %s120_s25, %s195_s1 }
  0x15   :  { %p126_p10 = pnand %p124_p9, %p121_p8 }
  0x17   :  { %129 = shalt.err (!%p126_p10)
}
  0x18   :  { %s130_s30 = scalar_lea.vmem %s26_s12, 768  ;;  %p135_p12 = scmp.lt.s32.totalorder %s26_s12, %s26_s12 }
  0x19   :  { %p131_p11 = scmp.ne.s32.totalorder %s26_s12, %s130_s30  ;;  %p136_p13 = scmp.lt.s32.totalorder %s130_s30, %s130_s30 }
  0x1b   :  { %p137_p0 = por %p136_p13, %p135_p12 }
  0x1d   :  { %p138_p1 = pnand %p137_p0, %p131_p11 }
  0x1f   :  { %141 = shalt.err (!%p138_p1)
}
  0x20   :  { %28 = dma.hbm_to_vmem [thread:$0]  %s195_s1, 768, %s26_s12, [#allocation6]  }
  0x21   :  { %142 = dma.done.wait [#allocation4], 768  }
  0x22   :  { %143 = vsyncadd [#allocation4], 4294966528 }
  0x23   :  { %144 = dma.done.wait [#allocation6], 768  }
  0x24   :  { %145 = vsyncadd [#allocation6], 4294966528  ;;  %vm39_vm0 = vcmask 7168   ;;  %v148_v0 = vmov 0.0   ;;  %v41_v1 = vld [vmem:[#allocation3] sm:$0xff]  ;;  %v42_v2 = vld [vmem:[#allocation3 + $0x8] sm:$0xff] }
  0x25   :  { %40 = vst.msk [vmem:[#allocation2] sm:$0xff] %vm39_vm0, %v148_v0  ;;  %v43_v3 = vld [vmem:[#allocation3 + $0x10] sm:$0xff]  ;;  %v44_v4 = vld [vmem:[#allocation3 + $0x18] sm:$0xff]  ;;  %v45_v5 = vld [vmem:[#allocation3 + $0x20] sm:$0xff] }
  0x26   :  { %v47_v6 = vld [vmem:[#allocation5] sm:$0xff]  ;;  %v48_v7 = vld [vmem:[#allocation5 + $0x8] sm:$0xff]  ;;  %v49_v8 = vld [vmem:[#allocation5 + $0x10] sm:$0xff] }
  0x27   :  { %v50_v9 = vld [vmem:[#allocation5 + $0x18] sm:$0xff]  ;;  %v51_v10 = vld [vmem:[#allocation5 + $0x20] sm:$0xff]  ;;  %v53_v11 = vsub.f32 %v41_v1, %v47_v6  ;;  %v54_v12 = vsub.f32 %v42_v2, %v48_v7  ;;  %v55_v13 = vsub.f32 %v43_v3, %v49_v8  ;;  %v52_v15 = vld [vmem:[#allocation5 + $0x28] sm:$0xff] }
  0x28   :  { %v46_v14 = vld [vmem:[#allocation3 + $0x28] sm:$0xff]  ;;  %v56_v16 = vsub.f32 %v44_v4, %v50_v9  ;;  %v57_v17 = vsub.f32 %v45_v5, %v51_v10 }
  0x29   :  { %v59_v18 = vmul.f32 %v53_v11, %v53_v11  ;;  %v60_v19 = vmul.f32 %v54_v12, %v54_v12  ;;  %v61_v20 = vmul.f32 %v55_v13, %v55_v13  ;;  %v58_v21 = vsub.f32 %v46_v14, %v52_v15 }
  0x2a   :  { %v62_v22 = vmul.f32 %v56_v16, %v56_v16  ;;  %v63_v24 = vmul.f32 %v57_v17, %v57_v17 }
  0x2b   :  { %v66_v23 = vadd.f32 %v60_v19, %v59_v18  ;;  %v64_v26 = vmul.f32 %v58_v21, %v58_v21 }
  0x2c   :  { %v65_v30 = vld [vmem:[#allocation2] sm:$0xff] }
  0x2d   :  { %v67_v25 = vadd.f32 %v66_v23, %v61_v20 }
  0x2f   :  { %v68_v27 = vadd.f32 %v67_v25, %v62_v22 }
  0x31   :  { %v69_v28 = vadd.f32 %v68_v27, %v63_v24 }
  0x33   :  { %v70_v29 = vadd.f32 %v69_v28, %v64_v26 }
  0x35   :  { %71 = vadd.xlane.f32.xlu0 %v70_v29 }
  0xc2   :  { %v72_v31 = vpop.xlane.xlu0 %71 }
  0xc3   :  { %v73_v32 = vadd.f32 %v72_v31, %v65_v30 }
  0xc5   :  { %75 = vst.msk [vmem:[#allocation2] sm:$0xff] %vm39_vm0, %v73_v32 }
  0xcc   :  { %v79_v33 = vld [vmem:[#allocation2] sm:$0xff] }
  0xcd   :  { %v80_v34 = vmul.f32 0.0013020834, %v79_v33 }
  0xcf   :  { %v81_v35 = vadd.f32 1e-08, %v80_v34 }
  0xd1   :  { %96 = vlog2.f32 %v81_v35 }
  0xdb   :  { %v97_v36 = vpop.eup %96 }
  0xdc   :  { %v83_v37 = vmul.f32 0.6931472, %v97_v36 }
  0xde   :  { %v84_v38 = vmul.f32 0.4342945, %v83_v37 }
  0xe0   :  { %v85_v39 = vmul.f32 -10.0, %v84_v38 }
  0xe2   :  { %86 = vst.msk [vmem:[%s196_s2] sm:$0xff] %vm39_vm0, %v85_v39 }
  0xe3   :  { %91 = vsyncpa [#allocation4], 1 }
  0xe4   :  { %92 = vsyncpa [#allocation6], 1 }

</bundles_post_ra>
